<compile_context>
chip_gen: v5e
topology: v5e:2x2
jax: 0.10.0
libtpu: 0.0.40
codegen_flags: <defaults>
</compile_context>

<pallas_src>
import functools

import jax
import jax.numpy as jnp
from jax.experimental import pallas as pl
from jax.experimental.pallas import tpu as pltpu


def _round_up(x, m):
    return (x + m - 1) // m * m


def _vmem_limit_bytes(tn, tv, dim, scores_itemsize):
    # double-buffered input/output tiles + CE scratch, with generous headroom.
    tile_in = tn * dim * 2 + dim * tv * 2 + tv * 4 + tn * 4      # x, W (bf16), b, y
    tile_out = tn * tv * scores_itemsize + tn * 4                # scores, per-token loss
    scratch = 3 * tn * 128 * 4                                   # m/l/picked (lane-padded)
    est = 2 * (tile_in + tile_out) + scratch
    return int(max(32 * 1024 * 1024, 2 * est))


# ---------------------------------------------------------------------------
# Kernel 1: projection only   scores = x @ W + b      (used when y is None)
# ---------------------------------------------------------------------------
def _proj_kernel(x_ref, w_ref, b_ref, o_ref):
    acc = jnp.dot(x_ref[...], w_ref[...], preferred_element_type=jnp.float32)
    o_ref[...] = (acc + b_ref[...]).astype(o_ref.dtype)


# ---------------------------------------------------------------------------
# Kernel 2: fused projection + cross entropy (online logsumexp over vocab)
#   grid = (row tiles, vocab tiles); vocab is the reduction ("arbitrary") axis
# ---------------------------------------------------------------------------
def _fused_kernel(x_ref, w_ref, b_ref, y_ref,
                  scores_ref, ploss_ref,
                  m_sc, l_sc, p_sc, *, tv):
    j = pl.program_id(1)

    @pl.when(j == 0)
    def _():
        m_sc[...] = jnp.full_like(m_sc, jnp.finfo(jnp.float32).min)
        l_sc[...] = jnp.zeros_like(l_sc)
        p_sc[...] = jnp.zeros_like(p_sc)

    # bf16 MXU matmul, f32 accumulation; bias add + softmax math stay in f32.
    s = jnp.dot(x_ref[...], w_ref[...], preferred_element_type=jnp.float32)
    s = s + b_ref[...]                                      # (tn, tv) f32
    scores_ref[...] = s.astype(scores_ref.dtype)

    labels = y_ref[...]                                     # (tn, 1) int32
    col = j * tv + jax.lax.broadcasted_iota(jnp.int32, s.shape, 1)
    p_sc[...] += jnp.sum(jnp.where(col == labels, s, 0.0),
                         axis=-1, keepdims=True)

    m_prev = m_sc[...]
    m_new = jnp.maximum(m_prev, jnp.max(s, axis=-1, keepdims=True))
    l_sc[...] = (jnp.exp(m_prev - m_new) * l_sc[...]
                 + jnp.sum(jnp.exp(s - m_new), axis=-1, keepdims=True))
    m_sc[...] = m_new

    @pl.when(j == pl.num_programs(1) - 1)
    def _():
        lse = m_sc[...] + jnp.log(l_sc[...])                # (tn, 1)
        valid = (labels >= 0).astype(jnp.float32)           # mask padded rows
        ploss_ref[...] = (lse - p_sc[...]) * valid


# ---------------------------------------------------------------------------
# XLMPredLayer wrapper (asm=False)
# ---------------------------------------------------------------------------
class XLMPredLayerPallas:
    """asm=False XLMPredLayer: Linear(dim -> n_words) + mean cross entropy."""

    def __init__(self, emb_dim, n_words, pad_index, key,
                 tn=256, tv=512, scores_dtype=jnp.float32):
        self.dim = emb_dim
        self.n_words = n_words
        self.pad_index = pad_index      # kept for parity; XLM masks pad tokens
                                        # upstream (F.cross_entropy here has no
                                        # ignore_index), so we match as-is.
        self.scores_dtype = scores_dtype
        self.tn_default = max(8, _round_up(tn, 8))
        self.tv = min(max(128, _round_up(tv, 128)), _round_up(n_words, 128))
        self.v_pad = _round_up(n_words, self.tv)

        kw, kb = jax.random.split(key)
        # nn.Linear(dim, n_words): weight (n_words, dim), bias (n_words,)
        bound = 1.0 / (emb_dim ** 0.5)
        weight = jax.random.uniform(kw, (n_words, emb_dim), jnp.float32,
                                    minval=-bound, maxval=bound)
        bias = jax.random.uniform(kb, (n_words,), jnp.float32,
                                  minval=-bound, maxval=bound)
        # Weight stored transposed, vocab-padded, in bf16 (MXU fast path and
        # halves the dominant dim x V HBM stream).
        w_t = jnp.zeros((emb_dim, self.v_pad), jnp.float32)
        w_t = w_t.at[:, :n_words].set(jnp.transpose(weight))
        self.w_t = w_t.astype(jnp.bfloat16)                  # (dim, V_pad) bf16
        # Padded vocab columns get a huge negative bias so they never affect
        # the logsumexp; real bias kept in f32.
        b_pad = jnp.full((1, self.v_pad), -1e30, jnp.float32)
        self.b = b_pad.at[0, :n_words].set(bias)             # (1, V_pad) f32

    # ------------------------------------------------------------------ #
    def _tiles(self, n_tokens):
        tn = min(self.tn_default, _round_up(n_tokens, 8))
        n_pad = _round_up(n_tokens, tn)
        return tn, n_pad

    def _scores_only(self, x_p, tn, n_pad):
        grid = (n_pad // tn, self.v_pad // self.tv)
        return pl.pallas_call(
            _proj_kernel,
            out_shape=jax.ShapeDtypeStruct((n_pad, self.v_pad), self.scores_dtype),
            grid_spec=pltpu.PrefetchScalarGridSpec(
                num_scalar_prefetch=0,
                grid=grid,
                in_specs=[
                    pl.BlockSpec((tn, self.dim), lambda i, j: (i, 0)),
                    pl.BlockSpec((self.dim, self.tv), lambda i, j: (0, j)),
                    pl.BlockSpec((1, self.tv), lambda i, j: (0, j)),
                ],
                out_specs=pl.BlockSpec((tn, self.tv), lambda i, j: (i, j)),
            ),
            compiler_params=pltpu.CompilerParams(
                dimension_semantics=("parallel", "parallel"),
                vmem_limit_bytes=_vmem_limit_bytes(
                    tn, self.tv, self.dim,
                    jnp.dtype(self.scores_dtype).itemsize),
            ),
        )(x_p, self.w_t, self.b)

    def _scores_and_loss(self, x_p, y_p, tn, n_pad):
        grid = (n_pad // tn, self.v_pad // self.tv)
        return pl.pallas_call(
            functools.partial(_fused_kernel, tv=self.tv),
            out_shape=(
                jax.ShapeDtypeStruct((n_pad, self.v_pad), self.scores_dtype),
                jax.ShapeDtypeStruct((n_pad, 1), jnp.float32),
            ),
            grid_spec=pltpu.PrefetchScalarGridSpec(
                num_scalar_prefetch=0,
                grid=grid,
                in_specs=[
                    pl.BlockSpec((tn, self.dim), lambda i, j: (i, 0)),
                    pl.BlockSpec((self.dim, self.tv), lambda i, j: (0, j)),
                    pl.BlockSpec((1, self.tv), lambda i, j: (0, j)),
                    pl.BlockSpec((tn, 1), lambda i, j: (i, 0)),
                ],
                out_specs=(
                    pl.BlockSpec((tn, self.tv), lambda i, j: (i, j)),
                    pl.BlockSpec((tn, 1), lambda i, j: (i, 0)),
                ),
                scratch_shapes=[pltpu.VMEM((tn, 1), jnp.float32)] * 3,
            ),
            compiler_params=pltpu.CompilerParams(
                dimension_semantics=("parallel", "arbitrary"),
                vmem_limit_bytes=_vmem_limit_bytes(
                    tn, self.tv, self.dim,
                    jnp.dtype(self.scores_dtype).itemsize),
            ),
        )(x_p, self.w_t, self.b, y_p)

    def __call__(self, x, y=None):
        lead = x.shape[:-1]
        x2d = x.reshape(-1, self.dim)
        n = x2d.shape[0]
        tn, n_pad = self._tiles(n)
        x_p = jnp.pad(x2d.astype(jnp.bfloat16), ((0, n_pad - n), (0, 0)))

        if y is None:
            scores_p = self._scores_only(x_p, tn, n_pad)
            scores = scores_p[:n, :self.n_words].reshape(*lead, self.n_words)
            return (scores,)

        y_p = jnp.pad(y.reshape(-1).astype(jnp.int32), (0, n_pad - n),
                      constant_values=-1).reshape(n_pad, 1)
        scores_p, per_tok = self._scores_and_loss(x_p, y_p, tn, n_pad)
        scores = scores_p[:n, :self.n_words].reshape(*lead, self.n_words)
        loss = jnp.sum(per_tok) / jnp.float32(n)   # mean over real tokens
        return (loss, scores)


if __name__ == "__main__":
    key = jax.random.PRNGKey(0)
    k_param, k_x, k_y = jax.random.split(key, 3)

    # Small synthetic config; exercises both row padding (14 -> 16 tokens)
    # and vocab padding / multi-block online logsumexp (1000 -> 2 x 512).
    B, S, DIM, N_WORDS = 2, 7, 32, 1000
    layer = XLMPredLayerPallas(emb_dim=DIM, n_words=N_WORDS, pad_index=2,
                               key=k_param)

    x = jax.random.normal(k_x, (B, S, DIM), dtype=jnp.float32)
    y = jax.random.randint(k_y, (B, S), 0, N_WORDS, dtype=jnp.int32)

    loss, scores = layer(x, y)
    (scores_only,) = layer(x)
    jax.block_until_ready((loss, scores, scores_only))

    # Reference (plain JAX) using the same bf16-rounded operands.
    x_bf = x.reshape(-1, DIM).astype(jnp.bfloat16).astype(jnp.float32)
    w_ref = layer.w_t[:, :N_WORDS].astype(jnp.float32)
    b_ref = layer.b[:, :N_WORDS]
    scores_ref = x_bf @ w_ref + b_ref
    lse = jax.scipy.special.logsumexp(scores_ref, axis=-1)
    picked = jnp.take_along_axis(scores_ref, y.reshape(-1, 1), axis=-1)[:, 0]
    loss_ref = jnp.mean(lse - picked)

    assert jnp.allclose(scores.reshape(-1, N_WORDS), scores_ref,
                        atol=2e-3, rtol=2e-3), "scores mismatch"
    assert jnp.allclose(scores_only.reshape(-1, N_WORDS), scores_ref,
                        atol=2e-3, rtol=2e-3), "scores-only mismatch"
    assert jnp.allclose(loss, loss_ref, atol=2e-3, rtol=2e-3), "loss mismatch"

    print("KERNEL_OK")
</pallas_src>

<mosaic_0001>
module attributes {stable_mosaic.version = 11 : i64} {
  func.func @_fused_kernel(%arg0: i32, %arg1: i32, %arg2: memref<16x32xbf16, #tpu.memory_space<vmem>>, %arg3: memref<32x512xbf16, #tpu.memory_space<vmem>>, %arg4: memref<1x512xf32, #tpu.memory_space<vmem>>, %arg5: memref<16x1xi32, #tpu.memory_space<vmem>>, %arg6: memref<16x512xf32, #tpu.memory_space<vmem>>, %arg7: memref<16x1xf32, #tpu.memory_space<vmem>>, %arg8: memref<16x1xf32, #tpu.memory_space<vmem>>, %arg9: memref<16x1xf32, #tpu.memory_space<vmem>>, %arg10: memref<16x1xf32, #tpu.memory_space<vmem>>) attributes {dimension_semantics = [#tpu.dimension_semantics<parallel>, #tpu.dimension_semantics<arbitrary>], iteration_bounds = array<i64: 1, 2>, scalar_prefetch = 0 : i64, scratch_operands = 3 : i64, tpu.core_type = #tpu.core_type<tc>, window_params = [{transform_indices = @transform_0, window_bounds = array<i64: 16, 32>}, {transform_indices = @transform_1, window_bounds = array<i64: 32, 512>}, {transform_indices = @transform_2, window_bounds = array<i64: 1, 512>}, {transform_indices = @transform_3, window_bounds = array<i64: 16, 1>}, {transform_indices = @transform_4, window_bounds = array<i64: 16, 512>}, {transform_indices = @transform_5, window_bounds = array<i64: 16, 1>}]} {
    %c0_i32 = arith.constant 0 : i32
    %0 = arith.cmpi eq, %arg1, %c0_i32 : i32
    %1 = arith.extui %0 : i1 to i32
    %c0_i32_0 = arith.constant 0 : i32
    %2 = arith.cmpi ne, %1, %c0_i32_0 : i32
    scf.if %2 {
      %cst_27 = arith.constant -3.40282347E+38 : f32
      %43 = vector.broadcast %cst_27 : f32 to vector<16x1xf32>
      %c0_28 = arith.constant 0 : index
      %c0_29 = arith.constant 0 : index
      %44 = vector.load %arg8[%c0_28, %c0_29] : memref<16x1xf32, #tpu.memory_space<vmem>>, vector<16x1xf32>
      tpu.vector_store %arg8[%c0_28, %c0_29], %43 {strides = array<i32>} : memref<16x1xf32, #tpu.memory_space<vmem>>, vector<16x1xf32>,
      %cst_30 = arith.constant 0.000000e+00 : f32
      %45 = vector.broadcast %cst_30 : f32 to vector<16x1xf32>
      %c0_31 = arith.constant 0 : index
      %c0_32 = arith.constant 0 : index
      %46 = vector.load %arg9[%c0_31, %c0_32] : memref<16x1xf32, #tpu.memory_space<vmem>>, vector<16x1xf32>
      tpu.vector_store %arg9[%c0_31, %c0_32], %45 {strides = array<i32>} : memref<16x1xf32, #tpu.memory_space<vmem>>, vector<16x1xf32>,
      %cst_33 = arith.constant 0.000000e+00 : f32
      %47 = vector.broadcast %cst_33 : f32 to vector<16x1xf32>
      %c0_34 = arith.constant 0 : index
      %c0_35 = arith.constant 0 : index
      %48 = vector.load %arg10[%c0_34, %c0_35] : memref<16x1xf32, #tpu.memory_space<vmem>>, vector<16x1xf32>
      tpu.vector_store %arg10[%c0_34, %c0_35], %47 {strides = array<i32>} : memref<16x1xf32, #tpu.memory_space<vmem>>, vector<16x1xf32>,
    } else {
    }
    %c0 = arith.constant 0 : index
    %c0_1 = arith.constant 0 : index
    %3 = vector.load %arg2[%c0, %c0_1] : memref<16x32xbf16, #tpu.memory_space<vmem>>, vector<16x32xbf16>
    %c0_2 = arith.constant 0 : index
    %c0_3 = arith.constant 0 : index
    %4 = vector.load %arg3[%c0_2, %c0_3] : memref<32x512xbf16, #tpu.memory_space<vmem>>, vector<32x512xbf16>
    %cst = arith.constant dense<0.000000e+00> : vector<16x512xf32>
    %5 = tpu.matmul %3, %4, %cst {dimension_numbers = #tpu.dot_dimension_numbers<[1], [0], [0], [1], [0, 0, 1, 1], [], []>} : vector<16x32xbf16>, vector<32x512xbf16>, vector<16x512xf32> -> vector<16x512xf32>
    %c0_4 = arith.constant 0 : index
    %c0_5 = arith.constant 0 : index
    %6 = vector.load %arg4[%c0_4, %c0_5] : memref<1x512xf32, #tpu.memory_space<vmem>>, vector<1x512xf32>
    %7 = vector.broadcast %6 : vector<1x512xf32> to vector<16x512xf32>
    %8 = arith.addf %5, %7 : vector<16x512xf32>
    %c0_6 = arith.constant 0 : index
    %c0_7 = arith.constant 0 : index
    %9 = vector.load %arg6[%c0_6, %c0_7] : memref<16x512xf32, #tpu.memory_space<vmem>>, vector<16x512xf32>
    tpu.vector_store %arg6[%c0_6, %c0_7], %8 {strides = array<i32>} : memref<16x512xf32, #tpu.memory_space<vmem>>, vector<16x512xf32>,
    %c0_8 = arith.constant 0 : index
    %c0_9 = arith.constant 0 : index
    %10 = vector.load %arg5[%c0_8, %c0_9] : memref<16x1xi32, #tpu.memory_space<vmem>>, vector<16x1xi32>
    %c512_i32 = arith.constant 512 : i32
    %11 = arith.muli %arg1, %c512_i32 : i32
    %12 = tpu.iota {dimensions = array<i32: 1>} : vector<16x512xi32>
    %13 = vector.broadcast %11 : i32 to vector<16x512xi32>
    %14 = arith.addi %13, %12 : vector<16x512xi32>
    %c0_10 = arith.constant 0 : index
    %c0_11 = arith.constant 0 : index
    %15 = vector.load %arg10[%c0_10, %c0_11] : memref<16x1xf32, #tpu.memory_space<vmem>>, vector<16x1xf32>
    %16 = vector.broadcast %10 : vector<16x1xi32> to vector<16x512xi32>
    %17 = arith.cmpi eq, %14, %16 : vector<16x512xi32>
    %cst_12 = arith.constant 0.000000e+00 : f32
    %18 = vector.broadcast %cst_12 : f32 to vector<16x512xf32>
    %19 = arith.select %17, %8, %18 : vector<16x512xi1>, vector<16x512xf32>
    %cst_13 = arith.constant dense<0.000000e+00> : vector<16xf32>
    %20 = vector.multi_reduction <add>, %19, %cst_13 [1] : vector<16x512xf32> to vector<16xf32>
    %21 = vector.shape_cast %20 : vector<16xf32> to vector<16x1xf32>
    %22 = arith.addf %15, %21 : vector<16x1xf32>
    %c0_14 = arith.constant 0 : index
    %c0_15 = arith.constant 0 : index
    %23 = vector.load %arg10[%c0_14, %c0_15] : memref<16x1xf32, #tpu.memory_space<vmem>>, vector<16x1xf32>
    tpu.vector_store %arg10[%c0_14, %c0_15], %22 {strides = array<i32>} : memref<16x1xf32, #tpu.memory_space<vmem>>, vector<16x1xf32>,
    %c0_16 = arith.constant 0 : index
    %c0_17 = arith.constant 0 : index
    %24 = vector.load %arg8[%c0_16, %c0_17] : memref<16x1xf32, #tpu.memory_space<vmem>>, vector<16x1xf32>
    %cst_18 = arith.constant dense<0xFF800000> : vector<16xf32>
    %25 = vector.multi_reduction <maximumf>, %8, %cst_18 [1] : vector<16x512xf32> to vector<16xf32>
    %26 = vector.shape_cast %25 : vector<16xf32> to vector<16x1xf32>
    %27 = arith.maximumf %24, %26 : vector<16x1xf32>
    %28 = arith.subf %24, %27 : vector<16x1xf32>
    %29 = math.exp %28 : vector<16x1xf32>
    %c0_19 = arith.constant 0 : index
    %c0_20 = arith.constant 0 : index
    %30 = vector.load %arg9[%c0_19, %c0_20] : memref<16x1xf32, #tpu.memory_space<vmem>>, vector<16x1xf32>
    %31 = arith.mulf %29, %30 : vector<16x1xf32>
    %32 = vector.broadcast %27 : vector<16x1xf32> to vector<16x512xf32>
    %33 = arith.subf %8, %32 : vector<16x512xf32>
    %34 = math.exp %33 : vector<16x512xf32>
    %cst_21 = arith.constant dense<0.000000e+00> : vector<16xf32>
    %35 = vector.multi_reduction <add>, %34, %cst_21 [1] : vector<16x512xf32> to vector<16xf32>
    %36 = vector.shape_cast %35 : vector<16xf32> to vector<16x1xf32>
    %37 = arith.addf %31, %36 : vector<16x1xf32>
    %c0_22 = arith.constant 0 : index
    %c0_23 = arith.constant 0 : index
    %38 = vector.load %arg9[%c0_22, %c0_23] : memref<16x1xf32, #tpu.memory_space<vmem>>, vector<16x1xf32>
    tpu.vector_store %arg9[%c0_22, %c0_23], %37 {strides = array<i32>} : memref<16x1xf32, #tpu.memory_space<vmem>>, vector<16x1xf32>,
    %c0_24 = arith.constant 0 : index
    %c0_25 = arith.constant 0 : index
    %39 = vector.load %arg8[%c0_24, %c0_25] : memref<16x1xf32, #tpu.memory_space<vmem>>, vector<16x1xf32>
    tpu.vector_store %arg8[%c0_24, %c0_25], %27 {strides = array<i32>} : memref<16x1xf32, #tpu.memory_space<vmem>>, vector<16x1xf32>,
    %c1_i32 = arith.constant 1 : i32
    %40 = arith.cmpi eq, %arg1, %c1_i32 : i32
    %41 = arith.extui %40 : i1 to i32
    %c0_i32_26 = arith.constant 0 : i32
    %42 = arith.cmpi ne, %41, %c0_i32_26 : i32
    scf.if %42 {
      %c0_27 = arith.constant 0 : index
      %c0_28 = arith.constant 0 : index
      %43 = vector.load %arg8[%c0_27, %c0_28] : memref<16x1xf32, #tpu.memory_space<vmem>>, vector<16x1xf32>
      %c0_29 = arith.constant 0 : index
      %c0_30 = arith.constant 0 : index
      %44 = vector.load %arg9[%c0_29, %c0_30] : memref<16x1xf32, #tpu.memory_space<vmem>>, vector<16x1xf32>
      %45 = math.log %44 : vector<16x1xf32>
      %46 = arith.addf %43, %45 : vector<16x1xf32>
      %c0_i32_31 = arith.constant 0 : i32
      %47 = vector.broadcast %c0_i32_31 : i32 to vector<16x1xi32>
      %48 = arith.cmpi sge, %10, %47 : vector<16x1xi32>
      %49 = arith.extui %48 : vector<16x1xi1> to vector<16x1xi32>
      %50 = arith.sitofp %49 : vector<16x1xi32> to vector<16x1xf32>
      %c0_32 = arith.constant 0 : index
      %c0_33 = arith.constant 0 : index
      %51 = vector.load %arg10[%c0_32, %c0_33] : memref<16x1xf32, #tpu.memory_space<vmem>>, vector<16x1xf32>
      %52 = arith.subf %46, %51 : vector<16x1xf32>
      %53 = arith.mulf %52, %50 : vector<16x1xf32>
      %c0_34 = arith.constant 0 : index
      %c0_35 = arith.constant 0 : index
      %54 = vector.load %arg7[%c0_34, %c0_35] : memref<16x1xf32, #tpu.memory_space<vmem>>, vector<16x1xf32>
      tpu.vector_store %arg7[%c0_34, %c0_35], %53 {strides = array<i32>} : memref<16x1xf32, #tpu.memory_space<vmem>>, vector<16x1xf32>,
    } else {
    }
    return
  }
  func.func @transform_0(%arg0: i32, %arg1: i32) -> (i32, i32) {
    %c0_i32 = arith.constant 0 : i32
    %c0_i32_0 = arith.constant 0 : i32
    return %arg0, %c0_i32 : i32, i32
  }
  func.func @transform_1(%arg0: i32, %arg1: i32) -> (i32, i32) {
    %c0_i32 = arith.constant 0 : i32
    %c0_i32_0 = arith.constant 0 : i32
    return %c0_i32, %arg1 : i32, i32
  }
  func.func @transform_2(%arg0: i32, %arg1: i32) -> (i32, i32) {
    %c0_i32 = arith.constant 0 : i32
    %c0_i32_0 = arith.constant 0 : i32
    return %c0_i32, %arg1 : i32, i32
  }
  func.func @transform_3(%arg0: i32, %arg1: i32) -> (i32, i32) {
    %c0_i32 = arith.constant 0 : i32
    %c0_i32_0 = arith.constant 0 : i32
    return %arg0, %c0_i32 : i32, i32
  }
  func.func @transform_4(%arg0: i32, %arg1: i32) -> (i32, i32) {
    %c0_i32 = arith.constant 0 : i32
    return %arg0, %arg1 : i32, i32
  }
  func.func @transform_5(%arg0: i32, %arg1: i32) -> (i32, i32) {
    %c0_i32 = arith.constant 0 : i32
    %c0_i32_0 = arith.constant 0 : i32
    return %arg0, %c0_i32 : i32, i32
  }
}

</mosaic_0001>

<bundles_post_ra>
// kernel: tpu_custom_call.1
= control target key start
LH: loop header
LB: loop body
LE: loop exit
PB: predicated region body
PF: predicated region fallthrough
CT: control target
= control target key end

     0   :  { %11 = vsyncpa [#allocation6], 0  ;;  %s1393_s0 = inlined_call_operand.vmem [shape: bf16[16,32], index: 0, kind: input, shape index: {}]   ;;  %s1394_s1 = inlined_call_operand.hbm [shape: bf16[32,1024], index: 1, kind: input, shape index: {}]   ;;  %s1395_s2 = inlined_call_operand.vmem [shape: f32[1,1024], index: 2, kind: input, shape index: {}]   ;;  %s1396_s3 = inlined_call_operand.vmem [shape: s32[16,1], index: 3, kind: input, shape index: {}]   ;;  %s1397_s4 = inlined_call_operand.hbm [shape: f32[16,1024], index: 4, kind: output, shape index: {0}]   ;;  %s1398_s5 = inlined_call_operand.vmem [shape: f32[16,1], index: 5, kind: output, shape index: {1}]  }
   0x1   :  { %13 = vsyncpa [#allocation6 + $0x1], 0 }
   0x2   :  { %14 = vsyncpa [#allocation7], 0 }
   0x3   :  { %16 = vsyncpa [#allocation7 + $0x1], 0  ;;  %s1140_s18 = smov 0   ;;  %s1142_s19 = smov 0  }
   0x4   :  { %s1144_s20 = smov 0   ;;  %s1146_s21 = smov 0  }
   0x5   :  { %s1148_s22 = smov 0   ;;  %s1150_s23 = smov 0  }
   0x6 LB: > { %s811_s24 = sadd.s32 4294967295, %s1098_s23   ;;  %s812_s25 = sadd.s32 4294967294, %s1098_s23   ;;  %s1098_s23 = sphi %s1150_s23, %s22_s23   ;;  %s1094_s22 = sphi %s1148_s22, %s1407_s22   ;;  %s1090_s21 = sphi %s1146_s21, %s1406_s21   ;;  %s1086_s20 = sphi %s1144_s20, %s1405_s20   ;;  %s1082_s19 = sphi %s1142_s19, %s1404_s19   ;;  %s1078_s18 = sphi %s1140_s18, %s1403_s18  }
   0x7   : > { %s31_s26 = sadd.s32 1, %s1094_s22  ;;  %s67_s27 = sadd.s32 1, %s1086_s20 }
   0x8   : > { %p32_p0 = scmp.ge.s32.totalorder %s31_s26, 2  ;;  %p74_p1 = scmp.ne.s32.totalorder %s1086_s20, %s1082_s19 }
   0x9   : > { %p75_p2 = scmp.eq.s32.totalorder %s1098_s23, 0  ;;  %p80_p3 = scmp.ne.s32.totalorder %s1082_s19, %s1078_s18 }
   0xa   : > { %s1409_s26 = smov (%p32_p0, %s31_s26), 0  ;;  %p81_p5 = scmp.eq.s32.totalorder %s811_s24, 0 }
   0xb   : > { %p1181_p4 = por %p75_p2, %p74_p1  ;;  %s64_s29 = ssub.s32 %s1094_s22, %s1409_s26 }
   0xc   : > { %p158_p6 = scmp.eq.s32.totalorder %s811_s24, 1  ;;  %p65_p7 = scmp.eq.s32.totalorder %s64_s29, 0 }
   0xd   : > { %p1187_p8 = por %p81_p5, %p80_p3  ;;  %p164_p10 = scmp.eq.s32.totalorder %s812_s25, 1 }
   0xe   : > { %p1191_p9 = por %p158_p6, %p74_p1  ;;  %p816_p12 = scmp.ge.s32.totalorder %s1098_s23, 2 }
   0xf   : > { %s1196_s7 = scalar_select %p65_p7, %s1086_s20, %s67_s27  }
  0x10   : > { %p1198_p11 = por %p164_p10, %p80_p3  ;;  %p899_p13 = scmp.lt.s32.totalorder %s1098_s23, 2 }
  0x11   : > { %s228_s9 = sand.u32 1, %s1086_s20   ;;  %s876_s11 = sshll.u32 %s1094_s22, 4 }
  0x12   : > { %s817_s10 = sshll.u32 %s228_s9, 6  ;;  %s237_s14 = scalar_lea.hbm %s1394_s1, %s876_s11 }
  0x13   : > { %s232_s15 = scalar_lea.vmem [#allocation5], %s817_s10  ;;  %s238_s17 = sshll.u32 %s237_s14, 4  ;;  %s239_s17 = int_to_ptr.hbm [resolvable:$true] %s238_s17 }
  0x14   : > { %s240_s16 = sshll.u32 %s232_s15, 4  ;;  %p892_p0 = pnand %p899_p13, %p1181_p4  ;;  %s241_s16 = int_to_ptr.vmem [resolvable:$true] %s240_s16 }
  0x15   : > { %s229_s24 = scalar_lea.sflag [#allocation6], %s228_s9  ;;  %s1100_s25 = smov 512  }
  0x16   : > { %s1101_s27 = smov 256   ;;  %s1102_s29 = smov 16  }
  0x17   : > { %894 = dma.hbm_to_vmem [thread:$0]  (!%p892_p0), %s239_s17, 1024, %s241_s16, %s229_s24, %s1100_s25, %s1101_s27, %s1102_s29  }
  0x18   : > { %p820_p1 = scmp.ge.s32.totalorder %s1098_s23, 1  ;;  %p256_p2 = scmp.lt.s32.totalorder %s1098_s23, 3 }
  0x1a   : > { %p257_p3 = pnand %p820_p1, %p256_p2 }
  0x1b   : > { %s1214_s12 = sand.u32 (!%p257_p3), 1, %s1082_s19  }
  0x1c   : > { %260 = sbr.rel (%p257_p3) target bundleno = 617 (0x269), region = 36  ;;  %s821_s10 = sshll.u32 (!%p257_p3), %s1214_s12, 6 }
  0x1d   : > { %s263_s11 = scalar_lea.sflag (!%p257_p3), [#allocation6], %s1214_s12  ;;  %s1218_s13 = scalar_lea.vmem (!%p257_p3), [#allocation5], %s821_s10 }
  0x21   : > { %1069 = dma.done.wait (%p1187_p8), %s263_s11, 1024  }
  0x22   : > { %1071 = vsyncadd (%p1187_p8), %s263_s11, 4294966272  ;;  %s823_s28 = sshll.u32 %s1090_s21, 2  ;;  %s1231_s16 = scalar_lea.vmem [#allocation8], %s821_s10 }
  0x23   : > { %p321_p4 = scmp.lt.s32.totalorder %s823_s28, 7  ;;  %p824_p5 = scmp.ne.s32.totalorder %s1090_s21, 0 }
  0x25   : > { %s1411_s28 = smov (!%p321_p4, %s823_s28), 7  ;;  %343 = sbr.rel (%p824_p5) target bundleno = 49 (0x31), region = 44 }
  0x26   : > { %s323_s15 = scalar_lea.vmem %s1395_s2, %s1411_s28 }
  0x2a   : > { %vm344_vm0 = vcmask 7168   ;;  %v1103_v0 = vmov -3.4028235e+38   ;;  %v1104_v1 = vmov 0.0  }
  0x2b   : > { %345 = vst.msk [vmem:[#allocation2] sm:$0xff] %vm344_vm0, %v1103_v0 }
  0x2c   : > { %346 = vst.msk [vmem:[#allocation2 + $0x8] sm:$0xff] %vm344_vm0, %v1103_v0 }
  0x2d   : > { %347 = vst.msk [vmem:[#allocation3] sm:$0xff] %vm344_vm0, %v1104_v1 }
  0x2e   : > { %348 = vst.msk [vmem:[#allocation3 + $0x8] sm:$0xff] %vm344_vm0, %v1104_v1 }
  0x2f   : > { %349 = vst.msk [vmem:[#allocation4] sm:$0xff] %vm344_vm0, %v1104_v1 }
  0x30   : > { %350 = vst.msk [vmem:[#allocation4 + $0x8] sm:$0xff] %vm344_vm0, %v1104_v1 }
  0x31 PF: > { %v847_v2 = vld [vmem:[%s1218_s13 + $0x20] sm:$0xf]  ;;  %v884_v3 = vld [vmem:[%s1218_s13 + $0x2c] sm:$0xf0]  ;;  %v882_v4 = vld [vmem:[%s1218_s13 + $0x24] sm:$0xf]  ;;  %v487_v31 = vlaneseq }
  0x32   : > { %v848_v5 = vor.u32 %v884_v3, %v847_v2  ;;  %v849_v6 = vld [vmem:[%s1218_s13 + $0x30] sm:$0xf0]  ;;  %v855_v7 = vld [vmem:[%s1218_s13 + $0x28] sm:$0xf]  ;;  %v885_v8 = vld [vmem:[%s1218_s13 + $0x34] sm:$0xf0] }
  0x33   : > { %v852_v9 = vor.u32 %v882_v4, %v849_v6  ;;  %v856_v10 = vor.u32 %v885_v8, %v855_v7  ;;  %v883_v11 = vld [vmem:[%s1218_s13 + $0x2c] sm:$0xf]  ;;  %v857_v12 = vld [vmem:[%s1218_s13 + $0x38] sm:$0xf0]  ;;  %v831_v13 = vld [vmem:[%s1218_s13] sm:$0xf] }
  0x34   : > { %426 = vmatpush.bf16.msra.mxu0 %v848_v5  ;;  %v860_v14 = vor.u32 %v883_v11, %v857_v12  ;;  %v880_v15 = vld [vmem:[%s1218_s13 + $0xc] sm:$0xf0]  ;;  %v878_v16 = vld [vmem:[%s1218_s13 + $0x4] sm:$0xf]  ;;  %v833_v17 = vld [vmem:[%s1218_s13 + $0x10] sm:$0xf0] }
  0x35   : > { %440 = vmatpush.bf16.msra.mxu1 %v852_v9  ;;  %454 = vmatpush.bf16.msra.mxu2 %v856_v10  ;;  %v832_v18 = vor.u32 %v880_v15, %v831_v13  ;;  %v836_v19 = vor.u32 %v878_v16, %v833_v17  ;;  %v839_v20 = vld [vmem:[%s1218_s13 + $0x8] sm:$0xf]  ;;  %v881_v21 = vld [vmem:[%s1218_s13 + $0x14] sm:$0xf0]  ;;  %v879_v22 = vld [vmem:[%s1218_s13 + $0xc] sm:$0xf] }
  0x36   : > { %468 = vmatpush.bf16.msra.mxu3 %v860_v14  ;;  %v840_v23 = vor.u32 %v881_v21, %v839_v20  ;;  %v841_v24 = vld [vmem:[%s1218_s13 + $0x18] sm:$0xf0]  ;;  %v1253_v25 = vld [vmem:[%s1396_s3] sm:$0xff]  ;;  %v1105_v28 = vmov 0   ;;  %vm416_vm1 = vcmask 261120   ;;  %v488_v35 = vand.u32 127, %v487_v31 }
  0x37   : > { %v844_v26 = vor.u32 %v879_v22, %v841_v24  ;;  %v877_v27 = vld [vmem:[%s1393_s0] sm:$0xff]  ;;  %960 = vset.pattern.permute.xlu2 %v1105_v28  ;;  %959 = vset.pattern.permute.xlu1 %v1105_v28  ;;  %v1262_v29 = vld [vmem:[%s1396_s3 + $0x8] sm:$0xff]  ;;  %s865_s13 = sshll.u32 %s1090_s21, 9  ;;  %vm533_vm10 = vcmask 7168   ;;  %p866_p6 = scmp.ne.s32.totalorder %s1090_s21, 1 }
  0x38   : > { %427 = vmatpush.bf16.msra.mxu0 %v832_v18  ;;  %500 = vperm.xlu2 %960, %v1253_v25   ;;  %v361_v30 = vld [vmem:[%s323_s15] sm:$0xf]  ;;  %v489_v40 = vadd.s32 128, %v488_v35  ;;  %v492_v41 = vstv %s865_s13  ;;  %v490_v54 = vadd.s32 256, %v488_v35  ;;  %v491_v58 = vadd.s32 384, %v488_v35 }
  0x39   : > { %441 = vmatpush.bf16.msra.mxu1 %v836_v19  ;;  %455 = vmatpush.bf16.msra.mxu2 %v840_v23  ;;  %v363_v33 = vperm.slane %v361_v30, 0  ;;  %v364_v34 = vperm.slane %v361_v30, 1  ;;  %v365_v42 = vperm.slane %v361_v30, 2  ;;  %v366_v43 = vperm.slane %v361_v30, 3  ;;  %v1325_v19 = vld [vmem:[#allocation2] sm:$0xff]  ;;  %v537_v23 = vld [vmem:[#allocation2 + $0x8] sm:$0xff] }
  0x3a   : > { %469 = vmatpush.bf16.msra.mxu3 %v844_v26  ;;  %961 = vset.pattern.permute.xlu0 %v1105_v28  ;;  %v493_v45 = vadd.s32 %v492_v41, %v488_v35  ;;  %v494_v46 = vadd.s32 %v492_v41, %v489_v40  ;;  %v495_v62 = vadd.s32 %v492_v41, %v490_v54  ;;  %v497_v28 = vld [vmem:[#allocation4] sm:$0xff] }
  0x3b   : > { %861 = vmatmul.msk.bf16.vlgmr.msra.gmra.mxu0 %vm416_vm1, %v877_v27  ;;  %v496_v1 = vadd.s32 %v492_v41, %v491_v58 }
  0x3c   : > { %862 = vmatmul.msk.bf16.vlgmr.msra.gmra.mxu1 %vm416_vm1, %v877_v27  ;;  %863 = vmatmul.msk.bf16.vlgmr.msra.gmra.mxu2 %vm416_vm1, %v877_v27 }
  0x3d   : > { %864 = vmatmul.msk.bf16.vlgmr.msra.gmra.mxu3 %vm416_vm1, %v877_v27 }
  0x40   : > { %503 = vperm.xlu2 %960, %v1262_v29  }
  0x92   : > { %v1270_v32 = vpop.permute.xlu2 %500 }
  0x93   : > { %vm505_vm4 = vcmp.eq.s32.totalorder %v493_v45, %v1270_v32  ;;  %vm506_vm5 = vcmp.eq.s32.totalorder %v494_v46, %v1270_v32  ;;  %vm507_vm8 = vcmp.eq.s32.totalorder %v495_v62, %v1270_v32  ;;  %vm508_vm9 = vcmp.eq.s32.totalorder %v496_v1, %v1270_v32 }
  0x9a   : > { %v504_v44 = vpop.permute.xlu2 %503 }
  0x9b   : > { %vm509_vm2 = vcmp.eq.s32.totalorder %v493_v45, %v504_v44  ;;  %vm510_vm3 = vcmp.eq.s32.totalorder %v494_v46, %v504_v44  ;;  %vm511_vm6 = vcmp.eq.s32.totalorder %v495_v62, %v504_v44  ;;  %vm512_vm7 = vcmp.eq.s32.totalorder %v496_v1, %v504_v44 }
  0xb8   : > { %v429_v36 = vpop.f32.mrf.mxu0 }
  0xb9   : > { %v1273_v37 = vadd.f32 %v429_v36, %v363_v33  ;;  %v443_v38 = vpop.f32.mrf.mxu1 }
  0xba   : > { %v1275_v39 = vadd.f32 %v443_v38, %v364_v34 }
  0xbb   : > { %476 = vst [vmem:[%s1231_s16] sm:$0xff] %v1273_v37  ;;  %v513_v6 = vsel %vm505_vm4, %v1273_v37, 0.0 }
  0xbc   : > { %477 = vst [vmem:[%s1231_s16 + $0x8] sm:$0xff] %v1275_v39  ;;  %v514_v7 = vsel %vm506_vm5, %v1275_v39, 0.0 }
  0xbd   : > { %v521_v13 = vadd.f32 %v514_v7, %v513_v6  ;;  %v556_v6 = vld [vmem:[#allocation3] sm:$0xff] }
  0xbf   : > { %v457_v47 = vpop.f32.mrf.mxu2 }
  0xc0   : > { %v1281_v48 = vadd.f32 %v457_v47, %v365_v42  ;;  %v471_v49 = vpop.f32.mrf.mxu3  ;;  %v431_v50 = vpop.f32.mrf.mxu0 }
  0xc1   : > { %v1283_v51 = vadd.f32 %v471_v49, %v366_v43  ;;  %v1285_v52 = vadd.f32 %v431_v50, %v363_v33  ;;  %v445_v53 = vpop.f32.mrf.mxu1 }
  0xc2   : > { %478 = vst [vmem:[%s1231_s16 + $0x10] sm:$0xff] %v1281_v48  ;;  %v1289_v55 = vadd.f32 %v445_v53, %v364_v34  ;;  %v538_v56 = vmax.f32 %v1273_v37, %v1281_v48  ;;  %v515_v15 = vsel %vm507_vm8, %v1281_v48, 0.0 }
  0xc3   : > { %479 = vst [vmem:[%s1231_s16 + $0x18] sm:$0xff] %v1283_v51  ;;  %v539_v57 = vmax.f32 %v1275_v39, %v1283_v51  ;;  %v517_v59 = vsel %vm509_vm2, %v1285_v52, 0.0  ;;  %v522_v16 = vadd.f32 %v521_v13, %v515_v15  ;;  %v516_v17 = vsel %vm508_vm9, %v1283_v51, 0.0 }
  0xc4   : > { %480 = vst [vmem:[%s1231_s16 + $0x20] sm:$0xff] %v1285_v52  ;;  %v518_v60 = vsel %vm510_vm3, %v1289_v55, 0.0 }
  0xc5   : > { %481 = vst [vmem:[%s1231_s16 + $0x28] sm:$0xff] %v1289_v55  ;;  %v540_v61 = vmax.f32 %v538_v56, %v539_v57  ;;  %v526_v63 = vadd.f32 %v518_v60, %v517_v59  ;;  %v523_v18 = vadd.f32 %v522_v16, %v516_v17 }
  0xc7   : > { %541 = vmax.xlane.f32.xlu0 %v540_v61  ;;  %v459_v0 = vpop.f32.mrf.mxu2 }
  0xc8   : > { %v1305_v2 = vadd.f32 %v459_v0, %v365_v42  ;;  %v473_v3 = vpop.f32.mrf.mxu3  ;;  %v498_v0 = vld [vmem:[#allocation4 + $0x8] sm:$0xff] }
  0xc9   : > { %v1307_v4 = vadd.f32 %v473_v3, %v366_v43 }
  0xca   : > { %482 = vst [vmem:[%s1231_s16 + $0x30] sm:$0xff] %v1305_v2  ;;  %v543_v5 = vmax.f32 %v1285_v52, %v1305_v2  ;;  %v519_v8 = vsel %vm511_vm6, %v1305_v2, 0.0 }
  0xcb   : > { %483 = vst [vmem:[%s1231_s16 + $0x38] sm:$0xff] %v1307_v4  ;;  %v544_v9 = vmax.f32 %v1289_v55, %v1307_v4  ;;  %v527_v10 = vadd.f32 %v526_v63, %v519_v8  ;;  %v520_v11 = vsel %vm512_vm7, %v1307_v4, 0.0 }
  0xcd   : > { %v545_v12 = vmax.f32 %v543_v5, %v544_v9  ;;  %v528_v14 = vadd.f32 %v527_v10, %v520_v11  ;;  %v557_v11 = vld [vmem:[#allocation3 + $0x8] sm:$0xff] }
  0xcf   : > { %546 = vmax.xlane.f32.xlu0 %v545_v12 }
  0xd7   : > { %524 = vadd.xlane.f32.xlu0 %v523_v18 }
 0x13a   : > { %v542_v20 = vpop.xlane.xlu0 %541 }
 0x13b   : > { %v548_v21 = vmax.f32 %v1325_v19, %v542_v20 }
 0x13d   : > { %v550_v22 = vsub.f32 %v1325_v19, %v548_v21  ;;  %608 = vst.msk [vmem:[#allocation2] sm:$0xff] %vm533_vm10, %v548_v21  ;;  %562 = vperm.xlu1 %959, %v548_v21  }
 0x13f   : > { %v552_v3 = vmul.f32 1.442695, %v550_v22 }
 0x142   : > { %v547_v24 = vpop.xlane.xlu0 %546 }
 0x143   : > { %v549_v26 = vmax.f32 %v537_v23, %v547_v24 }
 0x145   : > { %v551_v27 = vsub.f32 %v537_v23, %v549_v26  ;;  %609 = vst.msk [vmem:[#allocation2 + $0x8] sm:$0xff] %vm533_vm10, %v549_v26  ;;  %567 = vperm.xlu1 %959, %v549_v26  }
 0x14a   : > { %v525_v30 = vpop.xlane.xlu0 %524 }
 0x14b   : > { %v531_v31 = vadd.f32 %v525_v30, %v497_v28 }
 0x14d   : > { %534 = vst.msk [vmem:[#allocation4] sm:$0xff] %vm533_vm10, %v531_v31 }
 0x16f   : > { %529 = vadd.xlane.f32.xlu1 %v528_v14 }
 0x1af   : > { %v563_v32 = vpop.permute.xlu1 %562 }
 0x1b0   : > { %v570_v33 = vsub.f32 %v1273_v37, %v563_v32  ;;  %v571_v34 = vsub.f32 %v1275_v39, %v563_v32  ;;  %v572_v35 = vsub.f32 %v1281_v48, %v563_v32  ;;  %v573_v36 = vsub.f32 %v1283_v51, %v563_v32 }
 0x1b2   : > { %v578_v38 = vmul.f32 1.442695, %v570_v33  ;;  %v580_v40 = vmul.f32 1.442695, %v571_v34  ;;  %v582_v41 = vmul.f32 1.442695, %v572_v35 }
 0x1b3   : > { %v584_v42 = vmul.f32 1.442695, %v573_v36 }
 0x1b4   : > { %962 = vpow2.f32 %v578_v38 }
 0x1b5   : > { %964 = vpow2.f32 %v580_v40 }
 0x1b6   : > { %966 = vpow2.f32 %v582_v41 }
 0x1b7   : > { %v568_v43 = vpop.permute.xlu1 %567  ;;  %968 = vpow2.f32 %v584_v42 }
 0x1b8   : > { %v574_v44 = vsub.f32 %v1285_v52, %v568_v43  ;;  %v575_v45 = vsub.f32 %v1289_v55, %v568_v43  ;;  %v576_v37 = vsub.f32 %v1305_v2, %v568_v43  ;;  %v577_v39 = vsub.f32 %v1307_v4, %v568_v43 }
 0x1b9   : > { %v554_v4 = vmul.f32 1.442695, %v551_v27 }
 0x1ba   : > { %v963_v46 = vpop.eup %962  ;;  %v586_v47 = vmul.f32 1.442695, %v574_v44  ;;  %v588_v48 = vmul.f32 1.442695, %v575_v45  ;;  %v590_v50 = vmul.f32 1.442695, %v576_v37 }
 0x1bb   : > { %v965_v49 = vpop.eup %964  ;;  %v592_v54 = vmul.f32 1.442695, %v577_v39 }
 0x1bc   : > { %970 = vpow2.f32 %v586_v47  ;;  %v594_v51 = vadd.f32 %v965_v49, %v963_v46  ;;  %v967_v53 = vpop.eup %966 }
 0x1bd   : > { %972 = vpow2.f32 %v588_v48  ;;  %v969_v57 = vpop.eup %968 }
 0x1be   : > { %v595_v56 = vadd.f32 %v967_v53, %v594_v51  ;;  %974 = vpow2.f32 %v590_v50 }
 0x1bf   : > { %976 = vpow2.f32 %v592_v54 }
 0x1c0   : > { %v596_v52 = vadd.f32 %v969_v57, %v595_v56  ;;  %978 = vpow2.f32 %v552_v3 }
 0x1c1   : > { %980 = vpow2.f32 %v554_v4 }
 0x1c2   : > { %v971_v55 = vpop.eup %970  ;;  %597 = vadd.xlane.f32.xlu2 %v596_v52 }
 0x1c3   : > { %v973_v58 = vpop.eup %972 }
 0x1c4   : > { %v599_v59 = vadd.f32 %v973_v58, %v971_v55  ;;  %v975_v60 = vpop.eup %974 }
 0x1c5   : > { %v977_v62 = vpop.eup %976 }
 0x1c6   : > { %v600_v61 = vadd.f32 %v975_v60, %v599_v59  ;;  %v979_v5 = vpop.eup %978 }
 0x1c7   : > { %v558_v7 = vmul.f32 %v979_v5, %v556_v6  ;;  %v981_v10 = vpop.eup %980 }
 0x1c8   : > { %v601_v63 = vadd.f32 %v977_v62, %v600_v61  ;;  %v559_v12 = vmul.f32 %v981_v10, %v557_v11 }
 0x1ca   : > { %602 = vadd.xlane.f32.xlu0 %v601_v63 }
 0x1e2   : > { %v530_v1 = vpop.xlane.xlu1 %529 }
 0x1e3   : > { %v532_v2 = vadd.f32 %v530_v1, %v498_v0 }
 0x1e5   : > { %535 = vst.msk [vmem:[#allocation4 + $0x8] sm:$0xff] %vm533_vm10, %v532_v2 }
 0x235   : > { %v598_v8 = vpop.xlane.xlu2 %597 }
 0x236   : > { %v604_v9 = vadd.f32 %v598_v8, %v558_v7 }
 0x238   : > { %606 = vst.msk [vmem:[#allocation3] sm:$0xff] %vm533_vm10, %v604_v9 }
 0x23c   : > { %613 = sbr.rel (%p866_p6) target bundleno = 600 (0x258), region = 48 }
 0x23d   : > { %v603_v13 = vpop.xlane.xlu0 %602 }
 0x23e   : > { %v605_v14 = vadd.f32 %v603_v13, %v559_v12 }
 0x240   : > { %607 = vst.msk [vmem:[#allocation3 + $0x8] sm:$0xff] %vm533_vm10, %v605_v14 }
 0x241   : > { %v616_v15 = vld [vmem:[#allocation3] sm:$0xff]  ;;  %v614_v18 = vld [vmem:[#allocation2] sm:$0xff]  ;;  %vm624_vm11 = vcmp.ge.s32.totalorder %v1253_v25, 0  ;;  %v615_v21 = vld [vmem:[#allocation2 + $0x8] sm:$0xff]  ;;  %vm625_vm12 = vcmp.ge.s32.totalorder %v1262_v29, 0  ;;  %v1106_v27 = vmov 0.0  }
 0x242   : > { %982 = vlog2.f32 %v616_v15  ;;  %v630_v22 = vld [vmem:[#allocation4] sm:$0xff]  ;;  %v631_v26 = vld [vmem:[#allocation4 + $0x8] sm:$0xff]  ;;  %v867_v28 = vsel %vm624_vm11, 1.0, %v1106_v27  ;;  %v868_v32 = vsel %vm625_vm12, 1.0, %v1106_v27 }
 0x247   : > { %v617_v16 = vld [vmem:[#allocation3 + $0x8] sm:$0xff] }
 0x248   : > { %984 = vlog2.f32 %v617_v16  ;;  %v983_v17 = vpop.eup %982 }
 0x249   : > { %v619_v20 = vmul.f32 0.6931472, %v983_v17 }
 0x24b   : > { %v622_v24 = vadd.f32 %v619_v20, %v614_v18 }
 0x24d   : > { %v632_v31 = vsub.f32 %v622_v24, %v630_v22 }
 0x24e   : > { %v985_v19 = vpop.eup %984 }
 0x24f   : > { %v621_v23 = vmul.f32 0.6931472, %v985_v19  ;;  %v634_v34 = vmul.f32 %v867_v28, %v632_v31 }
 0x251   : > { %v623_v30 = vadd.f32 %v621_v23, %v615_v21  ;;  %636 = vst.msk [vmem:[%s1398_s5] sm:$0xff] %vm533_vm10, %v634_v34 }
 0x253   : > { %v633_v33 = vsub.f32 %v623_v30, %v631_v26 }
 0x255   : > { %v635_v35 = vmul.f32 %v868_v32, %v633_v33 }
 0x257   : > { %637 = vst.msk [vmem:[%s1398_s5 + $0x8] sm:$0xff] %vm533_vm10, %v635_v35 }
 0x258 PF: > { %s886_s30 = sshll.u32 %s1090_s21, 5  ;;  %s659_s27 = sshll.u32 %s1231_s16, 4  ;;  %s660_s27 = int_to_ptr.vmem [resolvable:$true] %s659_s27 }
 0x259   : > { %s658_s25 = scalar_lea.hbm %s1397_s4, %s886_s30  ;;  %s639_s10 = scalar_lea.sflag [#allocation7], %s1214_s12 }
 0x25a   : > { %s661_s29 = sshll.u32 %s658_s25, 4  ;;  %s1036_s21 = scalar_lea.hbm %s1397_s4, 128  ;;  %s662_s29 = int_to_ptr.hbm [resolvable:$true] %s661_s29 }
 0x25b   : > { %s1030_s11 = sshra.s32 %s662_s29, 4  ;;  %s1031_s11 = int_to_ptr.hbm [resolvable:$true] %s1030_s11 }
 0x25c   : > { %s1032_s13 = scalar_lea.hbm %s1031_s11, 64  ;;  %p1037_p13 = scmp.lt.s32.totalorder %s1031_s11, %s1397_s4 }
 0x25d   : > { %p1033_p7 = scmp.ne.s32.totalorder %s1031_s11, %s1032_s13  ;;  %p1038_p0 = scmp.lt.s32.totalorder %s1036_s21, %s1032_s13 }
 0x25f   : > { %p1034_p8 = pnand %p1033_p7, %p1191_p9  ;;  %p1039_p1 = por %p1038_p0, %p1037_p13 }
 0x261   : > { %p1035_p10 = pneg %p1034_p8 }
 0x263   : > { %p1040_p2 = pnand %p1039_p1, %p1035_p10 }
 0x265   : > { %1043 = shalt.err (!%p1040_p2)
}
 0x266   : > { %s1107_s12 = smov 512   ;;  %s1108_s16 = smov 1024  }
 0x267   : > { %s1109_s30 = smov 32  }
 0x268   : > { %889 = dma.vmem_to_hbm [thread:$0]  (%p1191_p9), %s660_s27, 1024, %s662_s29, %s639_s10, %s1107_s12, %s1108_s16, %s1109_s30  }
 0x269 PF: > { %s688_s17 = sand.u32 1, %s1078_s18   ;;  %p896_p3 = pnand %p816_p12, %p1198_p11 }
 0x26a   : > { %s689_s24 = scalar_lea.sflag [#allocation7], %s688_s17 }
 0x26b   : > { %p897_p4 = pneg %p896_p3 }
 0x26d   : > { %1073 = dma.done.wait (%p897_p4), %s689_s24, 1024  }
 0x26e   : > { %1075 = vsyncadd (%p897_p4), %s689_s24, 4294966272  ;;  %s22_s23 = sadd.s32 1, %s1098_s23   ;;  %s1403_s18 = smov %s1082_s19 }
 0x26f   : > { %p19_p5 = scmp.ge.s32.totalorder %s22_s23, 4   ;;  %s1404_s19 = smov %s1086_s20 }
 0x270   : > { %s1405_s20 = smov %s1196_s7  ;;  %s1406_s21 = smov %s1094_s22 }
 0x271   : > { %s1407_s22 = smov %s1409_s26  ;;  %21 = sbr.rel (!%p19_p5) target bundleno = 6 (0x6), region = 110 }
 0x276   :  { %695 = vsyncpa [#allocation6], 1 }
 0x277   :  { %697 = vsyncpa [#allocation6 + $0x1], 1 }
 0x278   :  { %698 = vsyncpa [#allocation7], 1 }
 0x279   :  { %700 = vsyncpa [#allocation7 + $0x1], 1 }

</bundles_post_ra>
